<compile_context>
chip_gen: v7x
topology: tpu7x:2x2x1
jax: 0.10.0
libtpu: 0.0.40
codegen_flags: <defaults>
</compile_context>

<pallas_src>
import jax
import jax.numpy as jnp
from jax.experimental import pallas as pl
from jax.experimental.pallas import tpu as pltpu


def _copy_kernel(x_ref, o_ref):
    # Pure identity copy of the current VMEM tile.
    o_ref[...] = x_ref[...]


def _sublane_multiple(dtype):
    # Sub-32-bit dtypes pack along sublanes: f32 -> 8, bf16 -> 16, int8/fp8 -> 32.
    itemsize = jnp.dtype(dtype).itemsize
    return max(8, (32 // (8 * itemsize)) * 8)


# Prefer the widest lane-dense slab that evenly divides the element count.
_LANE_CHOICES = (8192, 4096, 2048, 1024, 512, 256, 128)

# 4 MiB per tile.  With input + output each double-buffered that is ~16 MiB of
# VMEM resident, leaving ample headroom under v7x's 32 MiB scoped limit while
# amortizing the ~0.35 us per-grid-step overhead on all generations.
_TILE_BYTES_TARGET = 4 * 1024 * 1024


def _pallas_flat_copy(flat):
    """Identity-copy a flat 1D array through a lane-dense Pallas kernel.

    Returns None when the element count has no (rows, L) factorization with L
    a multiple of 128; the caller then falls back to the metadata-only reshape
    (which is the semantically exact .view() anyway).
    """
    total = flat.shape[0]
    lanes = None
    for cand in _LANE_CHOICES:
        if total % cand == 0:
            lanes = cand
            break
    if lanes is None:
        return None

    rows = total // lanes
    slab = flat.reshape(rows, lanes)

    itemsize = jnp.dtype(flat.dtype).itemsize
    sub = _sublane_multiple(flat.dtype)
    # Largest tile_rows (multiple of the sublane packing) under the byte target.
    tile_rows = max(sub, (_TILE_BYTES_TARGET // (lanes * itemsize)) // sub * sub)

    if rows <= tile_rows:
        # Single full-extent block (no (8,128) divisibility requirement when
        # the block equals the full array dims).
        block = (rows, lanes)
        grid = (1,)
    else:
        # Tiled row axis; Pallas handles the partial last block.
        block = (tile_rows, lanes)
        grid = (pl.cdiv(rows, tile_rows),)

    out = pl.pallas_call(
        _copy_kernel,
        out_shape=jax.ShapeDtypeStruct((rows, lanes), flat.dtype),
        grid_spec=pltpu.PrefetchScalarGridSpec(
            num_scalar_prefetch=0,
            grid=grid,
            in_specs=[pl.BlockSpec(block, lambda i: (i, 0))],
            out_specs=pl.BlockSpec(block, lambda i: (i, 0)),
        ),
        compiler_params=pltpu.CompilerParams(
            # Row grid shards across v7x's 2 TensorCores; harmless elsewhere.
            dimension_semantics=("parallel",),
        ),
    )(slab)
    return out.reshape(total)


class View:
    """JAX/Pallas equivalent of the PyTorch View module."""

    def __init__(self, size):
        self.size = tuple(size) if isinstance(size, (tuple, list)) else (size,)

    def __call__(self, tensor):
        flat = tensor.reshape(-1)
        copied = _pallas_flat_copy(flat)
        if copied is None:
            # No lane-dense factorization: skip the optional materialized copy
            # entirely and do the zero-cost metadata-only reshape. This is
            # exactly torch .view() semantics on a contiguous tensor.
            return tensor.reshape(self.size)
        # The actual view: metadata-only reshape (supports -1 like torch.view).
        return copied.reshape(self.size)


if __name__ == "__main__":
    key = jax.random.PRNGKey(0)

    # NCHW input, as a conv layer in VAAL would produce: batch=2, channels=4, 16x16.
    x = jax.random.normal(key, (2, 4, 16, 16), dtype=jnp.float32)

    # Typical VAAL usage: flatten feature maps per-sample -> View((-1, C*H*W)).
    view = View((-1, 4 * 16 * 16))
    y = jax.block_until_ready(view(x))

    expected = x.reshape(-1, 4 * 16 * 16)
    assert y.shape == (2, 1024), y.shape
    assert y.dtype == x.dtype
    assert bool(jnp.all(y == expected))

    # Odd element count (no 128-multiple factorization): exercises the
    # metadata-only fallback path.
    x2 = jax.random.normal(jax.random.PRNGKey(1), (3, 5, 7), dtype=jnp.float32)
    y2 = jax.block_until_ready(View((-1,))(x2))
    assert y2.shape == (105,)
    assert bool(jnp.all(y2 == x2.reshape(-1)))

    print("KERNEL_OK")
</pallas_src>

<mosaic_0001>
module attributes {stable_mosaic.version = 11 : i64} {
  func.func @_copy_kernel(%arg0: i32, %arg1: memref<1x2048xf32, #tpu.memory_space<vmem>>, %arg2: memref<1x2048xf32, #tpu.memory_space<vmem>>) attributes {dimension_semantics = [#tpu.dimension_semantics<parallel>], iteration_bounds = array<i64: 1>, scalar_prefetch = 0 : i64, scratch_operands = 0 : i64, tpu.core_type = #tpu.core_type<tc>, window_params = [{transform_indices = @transform_0, window_bounds = array<i64: 1, 2048>}, {transform_indices = @transform_1, window_bounds = array<i64: 1, 2048>}]} {
    %c0 = arith.constant 0 : index
    %c0_0 = arith.constant 0 : index
    %0 = vector.load %arg1[%c0, %c0_0] : memref<1x2048xf32, #tpu.memory_space<vmem>>, vector<1x2048xf32>
    %c0_1 = arith.constant 0 : index
    %c0_2 = arith.constant 0 : index
    %1 = vector.load %arg2[%c0_1, %c0_2] : memref<1x2048xf32, #tpu.memory_space<vmem>>, vector<1x2048xf32>
    tpu.vector_store %arg2[%c0_1, %c0_2], %0 {strides = array<i32>} : memref<1x2048xf32, #tpu.memory_space<vmem>>, vector<1x2048xf32>,
    return
  }
  func.func @transform_0(%arg0: i32) -> (i32, i32) {
    %c0_i32 = arith.constant 0 : i32
    %c0_i32_0 = arith.constant 0 : i32
    return %arg0, %c0_i32 : i32, i32
  }
  func.func @transform_1(%arg0: i32) -> (i32, i32) {
    %c0_i32 = arith.constant 0 : i32
    %c0_i32_0 = arith.constant 0 : i32
    return %arg0, %c0_i32 : i32, i32
  }
}

</mosaic_0001>

<bundles_post_ra>
// kernel: tpu_custom_call.1
= control target key start
LH: loop header
LB: loop body
LE: loop exit
PB: predicated region body
PF: predicated region fallthrough
CT: control target
= control target key end

     0   :  { %6 = vsyncpa [#allocation3], 0  ;;  %s126_s0 = inlined_call_operand.hbm [shape: f32[1,2048], index: 0, kind: input, shape index: {}]   ;;  %s127_s1 = inlined_call_operand.hbm [shape: f32[1,2048], index: 1, kind: output, shape index: {}]  }
   0x1   :  { %7 = vsyncpa [#allocation4], 0  ;;  %s90_s6 = smov [#allocation2]   ;;  %s42_s10 = scalar_lea.hbm %s126_s0, 256 }
   0x2   :  { %s14_s7 = sshll.u32 %s90_s6, 4  ;;  %p43_p0 = scmp.ne.s32.totalorder %s126_s0, %s42_s10  ;;  %s15_s7 = int_to_ptr.vmem [resolvable:$true] %s14_s7 }
   0x3   :  { %p46_p1 = scmp.lt.u32.totalorder %s42_s10, %s126_s0 }
   0x5   :  { %p48_p2 = pnand %p46_p1, %p43_p0 }
   0x7   :  { %51 = shalt.err (!%p48_p2)
}
   0x8   :  { %s52_s15 = scalar_lea.vmem %s15_s7, 256  ;;  %p57_p4 = scmp.lt.s32.totalorder %s15_s7, %s15_s7 }
   0x9   :  { %p53_p3 = scmp.ne.s32.totalorder %s15_s7, %s52_s15  ;;  %p58_p5 = scmp.lt.s32.totalorder %s52_s15, %s52_s15 }
   0xb   :  { %p59_p6 = por %p58_p5, %p57_p4 }
   0xd   :  { %p60_p7 = pnand %p59_p6, %p53_p3 }
   0xf   :  { %63 = shalt.err (!%p60_p7)
}
  0x10   :  { %17 = dma.hbm_to_vmem [thread:$0]  %s126_s0, 256, %s15_s7, [#allocation3]  }
  0x11   :  { %86 = dma.done.wait [#allocation3], 256  }
  0x12   :  { %87 = vsyncadd [#allocation3], 4294967040  ;;  %s91_s18 = smov [#allocation5]   ;;  %v21_v0 = vld [vmem:[#allocation2] sm:$0xff]  ;;  %v22_v1 = vld [vmem:[#allocation2 + $0x8] sm:$0xff] }
  0x13   :  { %s31_s19 = sshll.u32 %s91_s18, 4  ;;  %23 = vst [vmem:[#allocation5] sm:$0xff] %v21_v0  ;;  %24 = vst [vmem:[#allocation5 + $0x8] sm:$0xff] %v22_v1  ;;  %s32_s19 = int_to_ptr.vmem [resolvable:$true] %s31_s19 }
  0x14   :  { %s64_s20 = scalar_lea.vmem %s32_s19, 256  ;;  %p69_p9 = scmp.lt.s32.totalorder %s32_s19, %s32_s19 }
  0x15   :  { %p65_p8 = scmp.ne.s32.totalorder %s32_s19, %s64_s20  ;;  %p70_p10 = scmp.lt.s32.totalorder %s64_s20, %s64_s20 }
  0x17   :  { %p71_p11 = por %p70_p10, %p69_p9 }
  0x19   :  { %p72_p12 = pnand %p71_p11, %p65_p8 }
  0x1b   :  { %75 = shalt.err (!%p72_p12)
}
  0x1c   :  { %s76_s0 = scalar_lea.hbm %s127_s1, 256 }
  0x1d   :  { %p77_p13 = scmp.ne.s32.totalorder %s127_s1, %s76_s0  ;;  %p80_p0 = scmp.lt.u32.totalorder %s76_s0, %s127_s1 }
  0x1f   :  { %p82_p1 = pnand %p80_p0, %p77_p13 }
  0x21   :  { %85 = shalt.err (!%p82_p1)
}
  0x22   :  { %34 = dma.vmem_to_hbm [thread:$0]  %s32_s19, 256, %s127_s1, [#allocation4]  }
  0x23   :  { %88 = dma.done.wait [#allocation4], 256  }
  0x24   :  { %89 = vsyncadd [#allocation4], 4294967040 }
  0x25   :  { %38 = vsyncpa [#allocation3], 1 }
  0x26   :  { %39 = vsyncpa [#allocation4], 1 }

</bundles_post_ra>
